<compile_context>
chip_gen: v5e
topology: v5e:2x2
jax: 0.10.0
libtpu: 0.0.40
codegen_flags: <defaults>
</compile_context>

<pallas_src>
import jax
import jax.numpy as jnp
from jax.experimental import pallas as pl
from jax.experimental.pallas import tpu as pltpu

MAX_LENGTH = 10
HIDDEN_SIZE = 32     # small, consistent with the module (torch used 256)
OUTPUT_SIZE = 10     # target-language vocab size from the script
PAD = 128            # lane-dense padding for the L / O dimensions
NEG = -1e30          # mask value for padded logit lanes


def attn_decoder_kernel(tok_ref, emb_ref, h_ref, enc_ref, w_ref, b_ref, out_ref):
    """One decoder step.

    tok_ref : SMEM (1,) int32                  token index
    emb_ref : VMEM (O, H)                      embedding table
    h_ref   : VMEM (1, H)                      previous hidden state
    enc_ref : VMEM (PAD, H)                    encoder outputs, zero rows >= L
    w_ref   : VMEM (2H, 4*PAD) packed weights:
                [:,    0:128]  attn    (2H -> PAD), cols >= L zero
                [:,  128:256]  combine (2H -> PAD), cols >= H zero
                [:H, 256:384]  out     (H  -> PAD), cols >= O zero
                [:H, 384:480]  GRU W_ih^T (H -> 3H); [H:, 384:480] GRU W_hh^T
    b_ref   : VMEM (5, PAD) packed biases:
                row0 attn bias (NEG beyond L), row1 combine bias (cols :H),
                row2 gru b_ih (cols :3H), row3 gru b_hh (cols :3H),
                row4 out bias (NEG beyond O)
    out_ref : VMEM (3, PAD): row0 log-probs, row1 attn weights, row2 new hidden
    """
    f32 = jnp.float32
    H = h_ref.shape[1]
    G = 3 * H
    P = PAD

    tok = tok_ref[0]

    # embedded = embedding(x); dropout is identity at eval time.
    emb = emb_ref[pl.ds(tok, 1), :]                                   # (1, H)
    h = h_ref[...]                                                    # (1, H)

    # attn_weights = softmax(attn([emb ; h])) over PAD lanes (pad masked to -1e30)
    cat_eh = jnp.concatenate([emb, h], axis=1)                        # (1, 2H)
    logits = (jnp.dot(cat_eh, w_ref[:, 0:P], preferred_element_type=f32)
              + b_ref[0:1, :])                                        # (1, P)
    m = jnp.max(logits, axis=-1, keepdims=True)
    e = jnp.exp(logits - m)
    attn_w = e / jnp.sum(e, axis=-1, keepdims=True)                   # (1, P); lanes >= L exactly 0

    # attn_applied = attn_weights @ encoder_outputs  (padded rows contribute 0)
    attn_applied = jnp.dot(attn_w, enc_ref[...], preferred_element_type=f32)  # (1, H)

    # x = relu(attn_combine([emb ; attn_applied]))
    cat_ea = jnp.concatenate([emb, attn_applied], axis=1)             # (1, 2H)
    comb = (jnp.dot(cat_ea, w_ref[:, P:P + H], preferred_element_type=f32)
            + b_ref[1:2, :H])                                         # (1, H)
    x = jnp.maximum(comb, 0.0)

    # Single-step GRU (PyTorch gate order r, z, n) with two fused dots:
    #   gi = x @ W_ih^T + b_ih ; gh = h @ W_hh^T + b_hh
    gi = (jnp.dot(x, w_ref[:H, 3 * P:3 * P + G], preferred_element_type=f32)
          + b_ref[2:3, :G])                                           # (1, 3H)
    gh = (jnp.dot(h, w_ref[H:, 3 * P:3 * P + G], preferred_element_type=f32)
          + b_ref[3:4, :G])                                           # (1, 3H)
    r = jax.nn.sigmoid(gi[:, 0:H] + gh[:, 0:H])
    z = jax.nn.sigmoid(gi[:, H:2 * H] + gh[:, H:2 * H])
    n = jnp.tanh(gi[:, 2 * H:G] + r * gh[:, 2 * H:G])
    h_new = (1.0 - z) * n + z * h                                     # (1, H)

    # log_softmax(out(h_new)) over PAD lanes (pad masked by NEG bias)
    ologits = (jnp.dot(h_new, w_ref[:H, 2 * P:3 * P], preferred_element_type=f32)
               + b_ref[4:5, :])                                       # (1, P)
    m2 = jnp.max(ologits, axis=-1, keepdims=True)
    lse = jnp.log(jnp.sum(jnp.exp(ologits - m2), axis=-1, keepdims=True)) + m2
    logp = ologits - lse

    out_ref[0:1, :] = logp
    out_ref[1:2, :] = attn_w
    out_ref[2:3, :] = jnp.concatenate(
        [h_new, jnp.zeros((1, P - H), f32)], axis=1)


def init_params(key, hidden_size=HIDDEN_SIZE, output_size=OUTPUT_SIZE,
                max_length=MAX_LENGTH):
    """Deterministic parameter init matching the PyTorch module's shapes."""
    H, O, L = hidden_size, output_size, max_length
    ks = jax.random.split(key, 10)
    u = lambda k, shape, s: jax.random.uniform(k, shape, jnp.float32, -s, s)
    return {
        "embedding": jax.random.normal(ks[0], (O, H), jnp.float32),
        "attn_w": u(ks[1], (L, 2 * H), 1.0 / (2 * H) ** 0.5),
        "attn_b": u(ks[2], (L,), 1.0 / (2 * H) ** 0.5),
        "comb_w": u(ks[3], (H, 2 * H), 1.0 / (2 * H) ** 0.5),
        "comb_b": u(ks[4], (H,), 1.0 / (2 * H) ** 0.5),
        "gru_w_ih": u(ks[5], (3 * H, H), 1.0 / H ** 0.5),
        "gru_w_hh": u(ks[6], (3 * H, H), 1.0 / H ** 0.5),
        "gru_b_ih": u(ks[7], (3 * H,), 1.0 / H ** 0.5),
        "gru_b_hh": u(ks[8], (3 * H,), 1.0 / H ** 0.5),
        "out_w": u(ks[9], (O, H), 1.0 / H ** 0.5),
        "out_b": jnp.zeros((O,), jnp.float32),
    }


def prepare_params(params, max_length=MAX_LENGTH):
    """One-time packing: pre-transpose, pad and slab all weights (hoisted glue)."""
    f32 = jnp.float32
    emb = params["embedding"].astype(f32)
    O, H = emb.shape
    L = max_length
    G = 3 * H
    P = PAD

    w_attn = jnp.zeros((2 * H, P), f32).at[:, :L].set(params["attn_w"].T.astype(f32))
    w_comb = jnp.zeros((2 * H, P), f32).at[:, :H].set(params["comb_w"].T.astype(f32))
    w_out = jnp.zeros((2 * H, P), f32).at[:H, :O].set(params["out_w"].T.astype(f32))
    w_gru = (jnp.zeros((2 * H, P), f32)
             .at[:H, :G].set(params["gru_w_ih"].T.astype(f32))
             .at[H:, :G].set(params["gru_w_hh"].T.astype(f32)))
    w_slab = jnp.concatenate([w_attn, w_comb, w_out, w_gru], axis=1)   # (2H, 4P)

    b_attn = jnp.full((P,), NEG, f32).at[:L].set(params["attn_b"].astype(f32))
    b_out = jnp.full((P,), NEG, f32).at[:O].set(params["out_b"].astype(f32))
    b_slab = (jnp.zeros((5, P), f32)
              .at[0, :].set(b_attn)
              .at[1, :H].set(params["comb_b"].astype(f32))
              .at[2, :G].set(params["gru_b_ih"].astype(f32))
              .at[3, :G].set(params["gru_b_hh"].astype(f32))
              .at[4, :].set(b_out))

    # TODO(synk): a full greedy-decode loop inside one pallas_call (grid over
    # steps, weights resident in VMEM, scalar-prefetched tokens) would amortize
    # launch/DMA further, but the module's forward() is a single step, kept here.
    return {"embedding": emb, "w_slab": w_slab, "b_slab": b_slab}


def attn_decoder_forward(tok, hidden, encoder_outputs, packed):
    """
    tok:             int token index, shape () or (1,)
    hidden:          (1, 1, H)
    encoder_outputs: (L, H)
    packed:          output of prepare_params()
    returns (log_probs (1, O), new_hidden (1, 1, H), attn_weights (1, L))
    """
    emb_tbl = packed["embedding"]
    O, H = emb_tbl.shape
    L = encoder_outputs.shape[0]

    tok_arr = jnp.asarray(tok, dtype=jnp.int32).reshape(1)
    h2d = hidden.reshape(1, H).astype(jnp.float32)
    enc_pad = jnp.zeros((PAD, H), jnp.float32).at[:L, :].set(
        encoder_outputs.astype(jnp.float32))

    vmem = pl.BlockSpec(memory_space=pltpu.MemorySpace.VMEM)
    smem = pl.BlockSpec(memory_space=pltpu.MemorySpace.SMEM)

    out = pl.pallas_call(
        attn_decoder_kernel,
        out_shape=jax.ShapeDtypeStruct((3, PAD), jnp.float32),
        in_specs=[smem, vmem, vmem, vmem, vmem, vmem],
        out_specs=vmem,
    )(tok_arr, emb_tbl, h2d, enc_pad, packed["w_slab"], packed["b_slab"])

    logp = out[0:1, :O]
    attn_w = out[1:2, :L]
    h_new = out[2:3, :H].reshape(1, 1, H)
    return logp, h_new, attn_w


def _reference_forward(tok, hidden, enc, params):
    """Pure-JAX reference of the PyTorch forward (eval mode)."""
    H = params["embedding"].shape[1]
    emb = params["embedding"][tok].reshape(1, H)
    h = hidden.reshape(1, H)
    cat1 = jnp.concatenate([emb, h], axis=1)
    aw = jax.nn.softmax(cat1 @ params["attn_w"].T + params["attn_b"], axis=-1)
    applied = aw @ enc
    cat2 = jnp.concatenate([emb, applied], axis=1)
    x = jax.nn.relu(cat2 @ params["comb_w"].T + params["comb_b"])
    w_ih, w_hh = params["gru_w_ih"], params["gru_w_hh"]
    b_ih, b_hh = params["gru_b_ih"], params["gru_b_hh"]
    gi = x @ w_ih.T + b_ih
    gh = h @ w_hh.T + b_hh
    r = jax.nn.sigmoid(gi[:, :H] + gh[:, :H])
    z = jax.nn.sigmoid(gi[:, H:2 * H] + gh[:, H:2 * H])
    n = jnp.tanh(gi[:, 2 * H:] + r * gh[:, 2 * H:])
    h_new = (1 - z) * n + z * h
    logp = jax.nn.log_softmax(h_new @ params["out_w"].T + params["out_b"], axis=-1)
    return logp, h_new.reshape(1, 1, H), aw


if __name__ == "__main__":
    key = jax.random.PRNGKey(0)
    k_param, k_enc = jax.random.split(key)

    params = init_params(k_param)
    packed = prepare_params(params)          # one-time weight packing

    tok = jnp.array([3], dtype=jnp.int32)                       # decoder input token
    hidden = jnp.zeros((1, 1, HIDDEN_SIZE), jnp.float32)        # initHidden()
    encoder_outputs = jax.random.normal(k_enc, (MAX_LENGTH, HIDDEN_SIZE), jnp.float32)

    step = jax.jit(attn_decoder_forward)
    logp, h_new, attn_w = step(tok, hidden, encoder_outputs, packed)
    jax.block_until_ready((logp, h_new, attn_w))

    # quiet correctness check against a pure-JAX reference
    r_logp, r_h, r_aw = _reference_forward(int(tok[0]), hidden, encoder_outputs, params)
    assert logp.shape == (1, OUTPUT_SIZE) and h_new.shape == (1, 1, HIDDEN_SIZE)
    assert attn_w.shape == (1, MAX_LENGTH)
    assert jnp.allclose(logp, r_logp, atol=1e-4, rtol=1e-4)
    assert jnp.allclose(h_new, r_h, atol=1e-4, rtol=1e-4)
    assert jnp.allclose(attn_w, r_aw, atol=1e-4, rtol=1e-4)

    print("KERNEL_OK")
</pallas_src>

<mosaic_0001>
module attributes {stable_mosaic.version = 11 : i64} {
  func.func @attn_decoder_kernel(%arg0: memref<1xi32, #tpu.memory_space<smem>>, %arg1: memref<10x32xf32, #tpu.memory_space<vmem>>, %arg2: memref<1x32xf32, #tpu.memory_space<vmem>>, %arg3: memref<128x32xf32, #tpu.memory_space<vmem>>, %arg4: memref<64x512xf32, #tpu.memory_space<vmem>>, %arg5: memref<5x128xf32, #tpu.memory_space<vmem>>, %arg6: memref<3x128xf32, #tpu.memory_space<vmem>>) attributes {dimension_semantics = [], scalar_prefetch = 0 : i64, scratch_operands = 0 : i64, tpu.core_type = #tpu.core_type<tc>} {
    %c0 = arith.constant 0 : index
    %0 = memref.load %arg0[%c0] : memref<1xi32, #tpu.memory_space<smem>>
    %1 = arith.index_cast %0 : i32 to index
    %c0_0 = arith.constant 0 : index
    %2 = vector.load %arg1[%1, %c0_0] : memref<10x32xf32, #tpu.memory_space<vmem>>, vector<1x32xf32>
    %c0_1 = arith.constant 0 : index
    %c0_2 = arith.constant 0 : index
    %3 = vector.load %arg2[%c0_1, %c0_2] : memref<1x32xf32, #tpu.memory_space<vmem>>, vector<1x32xf32>
    %4 = tpu.concatenate %2, %3 in 1 : vector<1x32xf32>, vector<1x32xf32> -> vector<1x64xf32>
    %c0_3 = arith.constant 0 : index
    %c0_4 = arith.constant 0 : index
    %5 = vector.load %arg4[%c0_3, %c0_4] : memref<64x512xf32, #tpu.memory_space<vmem>>, vector<64x128xf32>
    %cst = arith.constant dense<0.000000e+00> : vector<1x128xf32>
    %6 = tpu.matmul %4, %5, %cst {dimension_numbers = #tpu.dot_dimension_numbers<[1], [0], [0], [1], [0, 0, 1, 1], [], []>} : vector<1x64xf32>, vector<64x128xf32>, vector<1x128xf32> -> vector<1x128xf32>
    %c0_5 = arith.constant 0 : index
    %c0_6 = arith.constant 0 : index
    %7 = vector.load %arg5[%c0_5, %c0_6] : memref<5x128xf32, #tpu.memory_space<vmem>>, vector<1x128xf32>
    %8 = arith.addf %6, %7 : vector<1x128xf32>
    %cst_7 = arith.constant dense<0xFF800000> : vector<1xf32>
    %9 = vector.multi_reduction <maximumf>, %8, %cst_7 [1] : vector<1x128xf32> to vector<1xf32>
    %10 = vector.shape_cast %9 : vector<1xf32> to vector<1x1xf32>
    %11 = vector.broadcast %10 : vector<1x1xf32> to vector<1x128xf32>
    %12 = arith.subf %8, %11 : vector<1x128xf32>
    %13 = math.exp %12 : vector<1x128xf32>
    %cst_8 = arith.constant dense<0.000000e+00> : vector<1xf32>
    %14 = vector.multi_reduction <add>, %13, %cst_8 [1] : vector<1x128xf32> to vector<1xf32>
    %15 = vector.shape_cast %14 : vector<1xf32> to vector<1x1xf32>
    %16 = vector.broadcast %15 : vector<1x1xf32> to vector<1x128xf32>
    %17 = arith.divf %13, %16 : vector<1x128xf32>
    %c0_9 = arith.constant 0 : index
    %c0_10 = arith.constant 0 : index
    %18 = vector.load %arg3[%c0_9, %c0_10] : memref<128x32xf32, #tpu.memory_space<vmem>>, vector<128x32xf32>
    %cst_11 = arith.constant dense<0.000000e+00> : vector<1x32xf32>
    %19 = tpu.matmul %17, %18, %cst_11 {dimension_numbers = #tpu.dot_dimension_numbers<[1], [0], [0], [1], [0, 0, 1, 1], [], []>} : vector<1x128xf32>, vector<128x32xf32>, vector<1x32xf32> -> vector<1x32xf32>
    %20 = tpu.concatenate %2, %19 in 1 : vector<1x32xf32>, vector<1x32xf32> -> vector<1x64xf32>
    %c0_12 = arith.constant 0 : index
    %c128 = arith.constant 128 : index
    %21 = vector.load %arg4[%c0_12, %c128] : memref<64x512xf32, #tpu.memory_space<vmem>>, vector<64x32xf32>
    %cst_13 = arith.constant dense<0.000000e+00> : vector<1x32xf32>
    %22 = tpu.matmul %20, %21, %cst_13 {dimension_numbers = #tpu.dot_dimension_numbers<[1], [0], [0], [1], [0, 0, 1, 1], [], []>} : vector<1x64xf32>, vector<64x32xf32>, vector<1x32xf32> -> vector<1x32xf32>
    %c1 = arith.constant 1 : index
    %c0_14 = arith.constant 0 : index
    %23 = vector.load %arg5[%c1, %c0_14] : memref<5x128xf32, #tpu.memory_space<vmem>>, vector<1x32xf32>
    %24 = arith.addf %22, %23 : vector<1x32xf32>
    %cst_15 = arith.constant 0.000000e+00 : f32
    %25 = vector.broadcast %cst_15 : f32 to vector<1x32xf32>
    %26 = arith.maximumf %24, %25 : vector<1x32xf32>
    %c0_16 = arith.constant 0 : index
    %c384 = arith.constant 384 : index
    %27 = vector.load %arg4[%c0_16, %c384] : memref<64x512xf32, #tpu.memory_space<vmem>>, vector<32x96xf32>
    %cst_17 = arith.constant dense<0.000000e+00> : vector<1x96xf32>
    %28 = tpu.matmul %26, %27, %cst_17 {dimension_numbers = #tpu.dot_dimension_numbers<[1], [0], [0], [1], [0, 0, 1, 1], [], []>} : vector<1x32xf32>, vector<32x96xf32>, vector<1x96xf32> -> vector<1x96xf32>
    %c2 = arith.constant 2 : index
    %c0_18 = arith.constant 0 : index
    %29 = vector.load %arg5[%c2, %c0_18] : memref<5x128xf32, #tpu.memory_space<vmem>>, vector<1x96xf32>
    %30 = arith.addf %28, %29 : vector<1x96xf32>
    %c32 = arith.constant 32 : index
    %c384_19 = arith.constant 384 : index
    %31 = vector.load %arg4[%c32, %c384_19] : memref<64x512xf32, #tpu.memory_space<vmem>>, vector<32x96xf32>
    %cst_20 = arith.constant dense<0.000000e+00> : vector<1x96xf32>
    %32 = tpu.matmul %3, %31, %cst_20 {dimension_numbers = #tpu.dot_dimension_numbers<[1], [0], [0], [1], [0, 0, 1, 1], [], []>} : vector<1x32xf32>, vector<32x96xf32>, vector<1x96xf32> -> vector<1x96xf32>
    %c3 = arith.constant 3 : index
    %c0_21 = arith.constant 0 : index
    %33 = vector.load %arg5[%c3, %c0_21] : memref<5x128xf32, #tpu.memory_space<vmem>>, vector<1x96xf32>
    %34 = arith.addf %32, %33 : vector<1x96xf32>
    %35 = vector.extract_strided_slice %30 {offsets = [0, 0], sizes = [1, 32], strides = [1, 1]} : vector<1x96xf32> to vector<1x32xf32>
    %36 = vector.extract_strided_slice %34 {offsets = [0, 0], sizes = [1, 32], strides = [1, 1]} : vector<1x96xf32> to vector<1x32xf32>
    %37 = arith.addf %35, %36 : vector<1x32xf32>
    %38 = arith.negf %37 : vector<1x32xf32>
    %39 = math.exp %38 : vector<1x32xf32>
    %cst_22 = arith.constant 1.000000e+00 : f32
    %40 = vector.broadcast %cst_22 : f32 to vector<1x32xf32>
    %41 = arith.addf %40, %39 : vector<1x32xf32>
    %42 = arith.divf %40, %41 : vector<1x32xf32>
    %43 = vector.extract_strided_slice %30 {offsets = [0, 32], sizes = [1, 32], strides = [1, 1]} : vector<1x96xf32> to vector<1x32xf32>
    %44 = vector.extract_strided_slice %34 {offsets = [0, 32], sizes = [1, 32], strides = [1, 1]} : vector<1x96xf32> to vector<1x32xf32>
    %45 = arith.addf %43, %44 : vector<1x32xf32>
    %46 = arith.negf %45 : vector<1x32xf32>
    %47 = math.exp %46 : vector<1x32xf32>
    %cst_23 = arith.constant 1.000000e+00 : f32
    %48 = vector.broadcast %cst_23 : f32 to vector<1x32xf32>
    %49 = arith.addf %48, %47 : vector<1x32xf32>
    %50 = arith.divf %48, %49 : vector<1x32xf32>
    %51 = vector.extract_strided_slice %30 {offsets = [0, 64], sizes = [1, 32], strides = [1, 1]} : vector<1x96xf32> to vector<1x32xf32>
    %52 = vector.extract_strided_slice %34 {offsets = [0, 64], sizes = [1, 32], strides = [1, 1]} : vector<1x96xf32> to vector<1x32xf32>
    %53 = arith.mulf %42, %52 : vector<1x32xf32>
    %54 = arith.addf %51, %53 : vector<1x32xf32>
    %55 = math.tanh %54 : vector<1x32xf32>
    %cst_24 = arith.constant 1.000000e+00 : f32
    %56 = vector.broadcast %cst_24 : f32 to vector<1x32xf32>
    %57 = arith.subf %56, %50 : vector<1x32xf32>
    %58 = arith.mulf %57, %55 : vector<1x32xf32>
    %59 = arith.mulf %50, %3 : vector<1x32xf32>
    %60 = arith.addf %58, %59 : vector<1x32xf32>
    %c0_25 = arith.constant 0 : index
    %c256 = arith.constant 256 : index
    %61 = vector.load %arg4[%c0_25, %c256] : memref<64x512xf32, #tpu.memory_space<vmem>>, vector<32x128xf32>
    %cst_26 = arith.constant dense<0.000000e+00> : vector<1x128xf32>
    %62 = tpu.matmul %60, %61, %cst_26 {dimension_numbers = #tpu.dot_dimension_numbers<[1], [0], [0], [1], [0, 0, 1, 1], [], []>} : vector<1x32xf32>, vector<32x128xf32>, vector<1x128xf32> -> vector<1x128xf32>
    %c4 = arith.constant 4 : index
    %c0_27 = arith.constant 0 : index
    %63 = vector.load %arg5[%c4, %c0_27] : memref<5x128xf32, #tpu.memory_space<vmem>>, vector<1x128xf32>
    %64 = arith.addf %62, %63 : vector<1x128xf32>
    %cst_28 = arith.constant dense<0xFF800000> : vector<1xf32>
    %65 = vector.multi_reduction <maximumf>, %64, %cst_28 [1] : vector<1x128xf32> to vector<1xf32>
    %66 = vector.shape_cast %65 : vector<1xf32> to vector<1x1xf32>
    %67 = vector.broadcast %66 : vector<1x1xf32> to vector<1x128xf32>
    %68 = arith.subf %64, %67 : vector<1x128xf32>
    %69 = math.exp %68 : vector<1x128xf32>
    %cst_29 = arith.constant dense<0.000000e+00> : vector<1xf32>
    %70 = vector.multi_reduction <add>, %69, %cst_29 [1] : vector<1x128xf32> to vector<1xf32>
    %71 = vector.shape_cast %70 : vector<1xf32> to vector<1x1xf32>
    %72 = math.log %71 : vector<1x1xf32>
    %73 = arith.addf %72, %66 : vector<1x1xf32>
    %74 = vector.broadcast %73 : vector<1x1xf32> to vector<1x128xf32>
    %75 = arith.subf %64, %74 : vector<1x128xf32>
    %c0_30 = arith.constant 0 : index
    %c0_31 = arith.constant 0 : index
    %76 = vector.load %arg6[%c0_30, %c0_31] : memref<3x128xf32, #tpu.memory_space<vmem>>, vector<1x128xf32>
    tpu.vector_store %arg6[%c0_30, %c0_31], %75 {strides = array<i32>} : memref<3x128xf32, #tpu.memory_space<vmem>>, vector<1x128xf32>,
    %c1_32 = arith.constant 1 : index
    %c0_33 = arith.constant 0 : index
    %77 = vector.load %arg6[%c1_32, %c0_33] : memref<3x128xf32, #tpu.memory_space<vmem>>, vector<1x128xf32>
    tpu.vector_store %arg6[%c1_32, %c0_33], %17 {strides = array<i32>} : memref<3x128xf32, #tpu.memory_space<vmem>>, vector<1x128xf32>,
    %cst_34 = arith.constant 0.000000e+00 : f32
    %78 = vector.broadcast %cst_34 : f32 to vector<1x96xf32>
    %79 = tpu.concatenate %60, %78 in 1 : vector<1x32xf32>, vector<1x96xf32> -> vector<1x128xf32>
    %c2_35 = arith.constant 2 : index
    %c0_36 = arith.constant 0 : index
    %80 = vector.load %arg6[%c2_35, %c0_36] : memref<3x128xf32, #tpu.memory_space<vmem>>, vector<1x128xf32>
    tpu.vector_store %arg6[%c2_35, %c0_36], %79 {strides = array<i32>} : memref<3x128xf32, #tpu.memory_space<vmem>>, vector<1x128xf32>,
    return
  }
}

</mosaic_0001>

<bundles_post_ra>
// kernel: attn_decoder_forward.1
= control target key start
LH: loop header
LB: loop body
LE: loop exit
PB: predicated region body
PF: predicated region fallthrough
CT: control target
= control target key end

     0   :  { %12 = vsyncpa [#allocation4], 0  ;;  %s383_s24 = smov [#allocation3]   ;;  %s384_s26 = smov 512   ;;  %s533_s0 = inlined_call_operand.<no memory space> [shape: s32[1], index: 0, kind: input, shape index: {}]   ;;  %s534_s1 = inlined_call_operand.vmem [shape: f32[10,32], index: 1, kind: input, shape index: {}]   ;;  %s535_s2 = inlined_call_operand.vmem [shape: f32[1,32], index: 2, kind: input, shape index: {}]   ;;  %s536_s3 = inlined_call_operand.vmem [shape: f32[128,32], index: 3, kind: input, shape index: {}]   ;;  %s537_s4 = inlined_call_operand.hbm [shape: f32[64,512], index: 4, kind: input, shape index: {}]   ;;  %s538_s5 = inlined_call_operand.vmem [shape: f32[5,128], index: 5, kind: input, shape index: {}]   ;;  %s539_s6 = inlined_call_operand.vmem [shape: f32[3,128], index: 6, kind: output, shape index: {}]  }
   0x1   :  { %s25_s23 = sshll.u32 %s537_s4, 4  ;;  %s27_s25 = sshll.u32 %s383_s24, 4  ;;  %s26_s23 = int_to_ptr.hbm [resolvable:$true] %s25_s23  ;;  %s28_s25 = int_to_ptr.vmem [resolvable:$true] %s27_s25 }
   0x2   :  { %s385_s27 = smov 32  }
   0x3   :  { %33 = dma.hbm_to_vmem [thread:$0]  %s26_s23, 4096, %s28_s25, [#allocation4], %s384_s26, %s384_s26, %s385_s27  }
   0x4   :  { %381 = dma.done.wait [#allocation4], 4096  }
   0x5   :  { %382 = vsyncadd [#allocation4], 4294963200  ;;  %v342_v0 = vld [vmem:[%s535_s2] ss:$0 sm:$0xff]  ;;  %s41_s9 = scalar_lea.vmem %s534_s1, %s533_s0  ;;  %vm49_vm0 = vcmask 261120   ;;  %vm60_vm1 = vcmask 523264  }
   0x6   :  { %v58_v1 = vld [vmem:[#allocation3 + $0xe0] sm:$0xff]  ;;  %46 = vrot.lane.b32.xlu0 %v342_v0, %s385_s27  ;;  %vm84_vm2 = vcmask 1040384   ;;  %v124_v16 = vld [vmem:[%s536_s3 + $0x78] sm:$0xff]  ;;  %v123_v17 = vld [vmem:[%s536_s3 + $0x70] sm:$0xff]  ;;  %s386_s22 = smov 64  }
   0x7   :  { %72 = vmatpush.msra.mxu0 %v58_v1  ;;  %v57_v2 = vld [vmem:[#allocation3 + $0xc0] sm:$0xff]  ;;  %125 = vmatpush.msra.mxu1 %v124_v16  ;;  %v122_v18 = vld [vmem:[%s536_s3 + $0x68] sm:$0xff]  ;;  %v120_v20 = vld [vmem:[%s536_s3 + $0x58] sm:$0xff] }
   0x8   :  { %v56_v3 = vld [vmem:[#allocation3 + $0xa0] sm:$0xff]  ;;  %v119_v21 = vld [vmem:[%s536_s3 + $0x50] sm:$0xff]  ;;  %v118_v27 = vld [vmem:[%s536_s3 + $0x48] sm:$0xff] }
   0x9   :  { %73 = vmatpush.msra.mxu0 %v57_v2  ;;  %v55_v4 = vld [vmem:[#allocation3 + $0x80] sm:$0xff]  ;;  %126 = vmatpush.msra.mxu1 %v123_v17  ;;  %v116_v29 = vld [vmem:[%s536_s3 + $0x38] sm:$0xff]  ;;  %v115_v30 = vld [vmem:[%s536_s3 + $0x30] sm:$0xff] }
   0xa   :  { %v54_v5 = vld [vmem:[#allocation3 + $0x60] sm:$0xff]  ;;  %v114_v31 = vld [vmem:[%s536_s3 + $0x28] sm:$0xff]  ;;  %v112_v33 = vld [vmem:[%s536_s3 + $0x18] sm:$0xff] }
   0xb   :  { %74 = vmatpush.msra.mxu0 %v56_v3  ;;  %v53_v6 = vld [vmem:[#allocation3 + $0x40] sm:$0xff]  ;;  %127 = vmatpush.msra.mxu1 %v122_v18  ;;  %v111_v34 = vld [vmem:[%s536_s3 + $0x10] sm:$0xff]  ;;  %v110_v35 = vld [vmem:[%s536_s3 + $0x8] sm:$0xff] }
   0xc   :  { %v52_v7 = vld [vmem:[#allocation3 + $0x20] sm:$0xff]  ;;  %v157_v49 = vld [vmem:[#allocation3 + $0xe8] sm:$0xff]  ;;  %v186_v58 = vld [vmem:[#allocation3 + $0x78] sm:$0xff] }
   0xd   :  { %75 = vmatpush.msra.mxu0 %v55_v4  ;;  %v51_v8 = vld [vmem:[#allocation3] sm:$0xff]  ;;  %v156_v50 = vld [vmem:[#allocation3 + $0xc8] sm:$0xff]  ;;  %170 = vmatpush.msra.mxu2 %v157_v49  ;;  %v185_v61 = vld [vmem:[#allocation3 + $0x58] sm:$0xff] }
   0xe   :  { %v437_v9 = vld [vmem:[%s41_s9] sm:$0x1]  ;;  %v155_v51 = vld [vmem:[#allocation3 + $0xa8] sm:$0xff]  ;;  %203 = vmatpush.msra.mxu3 %v186_v58  ;;  %v184_v62 = vld [vmem:[#allocation3 + $0x38] sm:$0xff] }
   0xf   :  { %76 = vmatpush.msra.mxu0 %v54_v5  ;;  %v59_v12 = vld [vmem:[%s538_s5] sm:$0x1]  ;;  %171 = vmatpush.msra.mxu2 %v156_v50  ;;  %v154_v52 = vld [vmem:[#allocation3 + $0x88] sm:$0xff]  ;;  %v183_v63 = vld [vmem:[#allocation3 + $0x18] sm:$0xff] }
  0x10   :  { %v121_v19 = vld [vmem:[%s536_s3 + $0x60] sm:$0xff]  ;;  %v153_v53 = vld [vmem:[#allocation3 + $0x68] sm:$0xff]  ;;  %204 = vmatpush.msra.mxu3 %v185_v61  ;;  %v214_v0 = vld [vmem:[#allocation3 + $0xf8] sm:$0xff] }
  0x11   :  { %77 = vmatpush.msra.mxu0 %v53_v6  ;;  %128 = vmatpush.msra.mxu1 %v121_v19  ;;  %v117_v28 = vld [vmem:[%s536_s3 + $0x40] sm:$0xff]  ;;  %v152_v54 = vld [vmem:[#allocation3 + $0x48] sm:$0xff]  ;;  %v213_v1 = vld [vmem:[#allocation3 + $0xd8] sm:$0xff] }
  0x12   :  { %v113_v32 = vld [vmem:[%s536_s3 + $0x20] sm:$0xff]  ;;  %172 = vmatpush.msra.mxu2 %v155_v51  ;;  %v151_v55 = vld [vmem:[#allocation3 + $0x28] sm:$0xff]  ;;  %205 = vmatpush.msra.mxu3 %v184_v62  ;;  %v212_v2 = vld [vmem:[#allocation3 + $0xb8] sm:$0xff] }
  0x13   :  { %78 = vmatpush.msra.mxu0 %v52_v7  ;;  %129 = vmatpush.msra.mxu1 %v120_v20  ;;  %v109_v36 = vld [vmem:[%s536_s3] sm:$0xff]  ;;  %v150_v57 = vld [vmem:[#allocation3 + $0x8] sm:$0xff]  ;;  %v211_v3 = vld [vmem:[#allocation3 + $0x98] sm:$0xff] }
  0x14   :  { %173 = vmatpush.msra.mxu2 %v154_v52  ;;  %206 = vmatpush.msra.mxu3 %v183_v63  ;;  %v158_v4 = vld [vmem:[%s538_s5 + $0x1] sm:$0x1] }
  0x15   :  { %79 = vmatpush.msra.mxu0 %v51_v8  ;;  %130 = vmatpush.msra.mxu1 %v119_v21  ;;  %v43_v8 = vld [vmem:[%s535_s2] sm:$0x1]  ;;  %s387_s2 = smov 96  }
  0x16   :  { %174 = vmatpush.msra.mxu2 %v153_v53  ;;  %230 = vmatpush.msrb.mxu3 %v214_v0 }
  0x17   :  { %131 = vmatpush.msra.mxu1 %v118_v27 }
  0x18   :  { %175 = vmatpush.msra.mxu2 %v152_v54  ;;  %231 = vmatpush.msrb.mxu3 %v213_v1 }
  0x19   :  { %132 = vmatpush.msra.mxu1 %v117_v28 }
  0x1a   :  { %176 = vmatpush.msra.mxu2 %v151_v55  ;;  %232 = vmatpush.msrb.mxu3 %v212_v2 }
  0x1b   :  { %133 = vmatpush.msra.mxu1 %v116_v29 }
  0x1c   :  { %177 = vmatpush.msra.mxu2 %v150_v57  ;;  %233 = vmatpush.msrb.mxu3 %v211_v3 }
  0x1d   :  { %134 = vmatpush.msra.mxu1 %v115_v30 }
  0x1f   :  { %135 = vmatpush.msra.mxu1 %v114_v31 }
  0x21   :  { %136 = vmatpush.msra.mxu1 %v113_v32 }
  0x23   :  { %137 = vmatpush.msra.mxu1 %v112_v33 }
  0x25   :  { %138 = vmatpush.msra.mxu1 %v111_v34 }
  0x27   :  { %139 = vmatpush.msra.mxu1 %v110_v35  ;;  %v280_v35 = vld [vmem:[#allocation3 + $0x70] sm:$0xff] }
  0x28   :  { %299 = vmatpush.msrb.mxu0 %v280_v35 }
  0x29   :  { %140 = vmatpush.msra.mxu1 %v109_v36  ;;  %v279_v36 = vld [vmem:[#allocation3 + $0x50] sm:$0xff] }
  0x2a   :  { %300 = vmatpush.msrb.mxu0 %v279_v36 }
  0x78   :  { %v439_v10 = vpop.permute.xlu0 %46 }
  0x79   :  { %v50_v11 = vsel %vm49_vm0, %v437_v9, %v439_v10 }
  0x7a   :  { %331 = vmatmul.msk.f32.vlgmr.msra.gmra.mxu0 %vm60_vm1, %v50_v11  ;;  %v215_v11 = vld [vmem:[%s538_s5 + $0x3] sm:$0x1] }
  0xf7   :  { %v81_v13 = vpop.f32.mrf.mxu0 }
  0xf8   :  { %v82_v14 = vadd.f32 %v81_v13, %v59_v12 }
  0xfa   :  { %v85_v15 = vsel %vm84_vm2, %v82_v14, -inf }
  0xfb   :  { %86 = vmax.xlane.f32.xlu0 %v85_v15 }
 0x16e   :  { %v87_v22 = vpop.xlane.xlu0 %86 }
 0x16f   :  { %v88_v23 = vsub.f32 %v82_v14, %v87_v22  ;;  %v187_v14 = vld [vmem:[%s538_s5 + $0x2] sm:$0x1] }
 0x171   :  { %v89_v24 = vmul.f32 1.442695, %v88_v23 }
 0x173   :  { %343 = vpow2.f32 %v89_v24 }
 0x179   :  { %v344_v25 = vpop.eup %343 }
 0x17a   :  { %v91_v26 = vsel %vm84_vm2, %v344_v25, 0.0 }
 0x17b   :  { %92 = vadd.xlane.f32.xlu1 %v91_v26 }
 0x1ee   :  { %v93_v37 = vpop.xlane.xlu1 %92 }
 0x1ef   :  { %345 = vrcp.f32 %v93_v37  ;;  %v105_v41 = vand.u32 2147483648, %v93_v37  ;;  %v103_v43 = vand.u32 2147483647, %v93_v37  ;;  %vm99_vm4 = vweird.f32 %v93_v37 }
 0x1f1   :  { %v106_v45 = vor.u32 1.1754944e-38, %v105_v41  ;;  %vm104_vm6 = vcmp.eq.f32.partialorder %v103_v43, 8.507059e+37 }
 0x1f5   :  { %v346_v38 = vpop.eup %345 }
 0x1f6   :  { %v95_v39 = vmul.f32 %v346_v38, %v93_v37  ;;  %vm100_vm3 = vweird.f32 %v346_v38  ;;  %v278_v37 = vld [vmem:[#allocation3 + $0x30] sm:$0xff] }
 0x1f7   :  { %vm101_vm5 = vmor %vm99_vm4, %vm100_vm3  ;;  %301 = vmatpush.msrb.mxu0 %v278_v37 }
 0x1f8   :  { %v96_v40 = vsub.f32 1.0, %v95_v39 }
 0x1fa   :  { %v97_v42 = vmul.f32 %v346_v38, %v96_v40 }
 0x1fc   :  { %v98_v44 = vadd.f32 %v346_v38, %v97_v42 }
 0x1fe   :  { %v102_v46 = vsel %vm101_vm5, %v346_v38, %v98_v44  ;;  %v277_v38 = vld [vmem:[#allocation3 + $0x10] sm:$0xff] }
 0x1ff   :  { %v107_v47 = vsel %vm104_vm6, %v106_v45, %v102_v46  ;;  %302 = vmatpush.msrb.mxu0 %v277_v38  ;;  %v281_v46 = vld [vmem:[%s538_s5 + $0x4] sm:$0x1] }
 0x200   :  { %v108_v48 = vmul.f32 %v344_v25, %v107_v47 }
 0x202   :  { %141 = vmatmul.f32.vlgmr.msra.gmra.mxu1 %v108_v48  ;;  %321 = vst [vmem:[%s539_s6 + $0x1] sm:$0x1] %v108_v48 }
 0x27f   :  { %v142_v56 = vpop.f32.mrf.mxu1 }
 0x280   :  { %146 = vrot.lane.b32.xlu1 %v142_v56, %s385_s27 }
 0x2f2   :  { %v147_v59 = vpop.permute.xlu1 %146 }
 0x2f3   :  { %v149_v60 = vsel %vm49_vm0, %v437_v9, %v147_v59 }
 0x2f4   :  { %332 = vmatmul.msk.f32.vlgmr.msra.gmra.mxu2 %vm60_vm1, %v149_v60 }
 0x377   :  { %v179_v5 = vpop.f32.mrf.mxu2 }
 0x378   :  { %v180_v6 = vadd.f32 %v179_v5, %v158_v4 }
 0x37a   :  { %v182_v7 = vmax.f32 %v180_v6, 0.0 }
 0x37c   :  { %333 = vmatmul.msk.f32.vlgmr.msra.gmra.mxu3 %vm49_vm0, %v182_v7 }
 0x384   :  { %334 = vmatmul.msk.f32.vlgmr.msrb.gmra.mxu3 %vm49_vm0, %v43_v8 }
 0x3ff   :  { %v208_v9 = vpop.f32.mrf.mxu3 }
 0x400   :  { %v209_v15 = vadd.f32 %v208_v9, %v187_v14 }
 0x407   :  { %v235_v12 = vpop.f32.mrf.mxu3 }
 0x408   :  { %v236_v13 = vadd.f32 %v235_v12, %v215_v11 }
 0x40a   :  { %259 = vrot.lane.b32.xlu2 %v236_v13, %s386_s22  ;;  %v238_v16 = vadd.f32 %v236_v13, %v209_v15 }
 0x40c   :  { %v335_v17 = vmul.f32 -1.442695, %v238_v16 }
 0x40e   :  { %347 = vpow2.f32 %v335_v17 }
 0x414   :  { %v348_v18 = vpop.eup %347 }
 0x415   :  { %v242_v19 = vadd.f32 1.0, %v348_v18 }
 0x417   :  { %349 = vrcp.f32 %v242_v19  ;;  %v254_v25 = vand.u32 2147483648, %v242_v19  ;;  %vm248_vm8 = vweird.f32 %v242_v19  ;;  %v252_v26 = vand.u32 2147483647, %v242_v19 }
 0x419   :  { %v255_v28 = vor.u32 1.1754944e-38, %v254_v25  ;;  %vm253_vm10 = vcmp.eq.f32.partialorder %v252_v26, 8.507059e+37 }
 0x41d   :  { %v350_v20 = vpop.eup %349 }
 0x41e   :  { %v244_v21 = vmul.f32 %v350_v20, %v242_v19  ;;  %vm249_vm7 = vweird.f32 %v350_v20 }
 0x41f   :  { %vm250_vm9 = vmor %vm248_vm8, %vm249_vm7 }
 0x420   :  { %v245_v22 = vsub.f32 1.0, %v244_v21 }
 0x422   :  { %v246_v23 = vmul.f32 %v350_v20, %v245_v22 }
 0x424   :  { %v247_v24 = vadd.f32 %v350_v20, %v246_v23 }
 0x426   :  { %v251_v27 = vsel %vm250_vm9, %v350_v20, %v247_v24 }
 0x427   :  { %v256_v30 = vsel %vm253_vm10, %v255_v28, %v251_v27 }
 0x428   :  { %v269_v39 = vsub.f32 1.0, %v256_v30  ;;  %v275_v41 = vmul.f32 %v256_v30, %v439_v10 }
 0x464   :  { %v260_v29 = vpop.permute.xlu2 %259 }
 0x465   :  { %v262_v31 = vmul.f32 %v260_v29, %v256_v30 }
 0x467   :  { %264 = vrot.lane.b32.xlu2 %v262_v31, %s386_s22 }
 0x4c1   :  { %v265_v32 = vpop.permute.xlu2 %264 }
 0x4c2   :  { %v267_v33 = vadd.f32 %v265_v32, %v209_v15 }
 0x4c4   :  { %351 = vtanh.f32 %v267_v33 }
 0x4ca   :  { %v352_v34 = vpop.eup %351 }
 0x4cb   :  { %271 = vrot.lane.b32.xlu2 %v352_v34, %s387_s2 }
 0x525   :  { %v272_v40 = vpop.permute.xlu2 %271 }
 0x526   :  { %v274_v42 = vmul.f32 %v272_v40, %v269_v39 }
 0x528   :  { %v276_v43 = vadd.f32 %v275_v41, %v274_v42 }
 0x52a   :  { %283 = vrot.lane.b32.xlu2 %v276_v43, %s387_s2 }
 0x584   :  { %v284_v44 = vpop.permute.xlu2 %283 }
 0x585   :  { %v323_v45 = vsel %vm49_vm0, %v284_v44, 0.0  ;;  %336 = vmatmul.msk.f32.vlgmr.msrb.gmra.mxu0 %vm49_vm0, %v284_v44 }
 0x586   :  { %324 = vst [vmem:[%s539_s6 + $0x2] sm:$0x1] %v323_v45 }
 0x602   :  { %v304_v47 = vpop.f32.mrf.mxu0 }
 0x603   :  { %v305_v48 = vadd.f32 %v304_v47, %v281_v46 }
 0x605   :  { %v307_v10 = vsel %vm84_vm2, %v305_v48, -inf }
 0x606   :  { %308 = vmax.xlane.f32.xlu2 %v307_v10 }
 0x679   :  { %v309_v49 = vpop.xlane.xlu2 %308 }
 0x67a   :  { %v310_v50 = vsub.f32 %v305_v48, %v309_v49 }
 0x67c   :  { %v311_v51 = vmul.f32 1.442695, %v310_v50 }
 0x67e   :  { %353 = vpow2.f32 %v311_v51 }
 0x684   :  { %v354_v52 = vpop.eup %353 }
 0x685   :  { %v313_v53 = vsel %vm84_vm2, %v354_v52, 0.0 }
 0x686   :  { %314 = vadd.xlane.f32.xlu1 %v313_v53 }
 0x6f9   :  { %v315_v54 = vpop.xlane.xlu1 %314 }
 0x6fa   :  { %355 = vlog2.f32 %v315_v54 }
 0x700   :  { %v356_v55 = vpop.eup %355 }
 0x701   :  { %v317_v56 = vmul.f32 0.6931472, %v356_v55 }
 0x703   :  { %v318_v57 = vadd.f32 %v317_v56, %v309_v49 }
 0x705   :  { %v319_v58 = vsub.f32 %v305_v48, %v318_v57 }
 0x707   :  { %320 = vst [vmem:[%s539_s6] sm:$0x1] %v319_v58 }
 0x708   :  { %329 = vsyncpa [#allocation4], 1 }

</bundles_post_ra>
